<compile_context>
chip_gen: v6e
topology: v6e:2x2x1
jax: 0.10.0
libtpu: 0.0.40
codegen_flags: <defaults>
</compile_context>

<pallas_src>
import jax
import jax.numpy as jnp
from jax import lax
from jax.experimental import pallas as pl
from jax.experimental.pallas import tpu as pltpu


def _dot(a, b):
    # Native-dtype operands into the MXU, f32 accumulation.  For fp32 operands
    # force the full-precision (multi-pass) MXU path so we match a true fp32
    # PyTorch Conv1d; bf16 operands keep the single-pass fast path.
    prec = lax.Precision.HIGHEST if a.dtype == jnp.float32 else None
    return jnp.dot(a, b, preferred_element_type=jnp.float32, precision=prec)


def conv_block_kernel(len_ref, xc_ref, xl_ref, xr_ref,
                      w1c_ref, b1_ref, w2_ref, b2_ref, out_ref):
    b = pl.program_id(0)
    i = pl.program_id(1)
    n_t = pl.num_programs(1)
    t_tile = xc_ref.shape[1]
    C = xc_ref.shape[2]
    in_dt = xc_ref.dtype

    length = len_ref[b]

    xc = xc_ref[0]                                        # (tT, C)
    # 8-row halo blocks from neighbouring tiles; zeroed at the sequence ends so
    # the convs see the Conv1d zero padding there (index_map clamps the index).
    # (0/1 multiply also works for integer dtypes.)
    xl = xl_ref[0] * (i > 0).astype(in_dt)                # rows [i*tT-8, i*tT)
    xr = xr_ref[0] * (i < n_t - 1).astype(in_dt)          # rows [(i+1)*tT, +8)

    row = lax.broadcasted_iota(jnp.int32, (t_tile, 1), 0)
    mask_c = ((i * t_tile + row) < length).astype(jnp.float32)   # (tT, 1)

    b1 = b1_ref[...].astype(jnp.float32)                  # (1, W)
    b2 = b2_ref[...].astype(jnp.float32)                  # (1, C)

    # Per-tap conv1 weights are static slices of the tap-concatenated weight
    # (free / aligned for C % 8 == 0).
    w1_0 = w1c_ref[0:C, :]
    w1_1 = w1c_ref[C:2 * C, :]
    w1_2 = w1c_ref[2 * C:3 * C, :]

    # ---- conv1 (C -> W): input-side rolls, no boundary fixup matmuls --------
    # Patch the wrap-around row of the rolled *input* (narrow, native dtype)
    # instead of rolling/fixing the wide f32 outputs.
    x_prev = pltpu.roll(xc, shift=1, axis=0)              # row t <- xc[t-1]
    x_prev = jnp.where(row == 0, xl[7:8, :], x_prev)      # x[i*tT - 1]
    x_next = pltpu.roll(xc, shift=t_tile - 1, axis=0)     # row t <- xc[t+1]
    x_next = jnp.where(row == t_tile - 1, xr[0:1, :], x_next)   # x[(i+1)*tT]

    acc = _dot(xc, w1_1) + b1
    acc = acc + _dot(x_prev, w1_0)
    acc = acc + _dot(x_next, w1_2)
    h = jnp.maximum(acc * mask_c, 0.0)                    # (tT, W) f32

    # ---- h halo rows (t = i*tT - 1 and t = (i+1)*tT): ONE small matmul ------
    halo_x = jnp.concatenate(
        [jnp.concatenate([xl[6:7, :], xl[7:8, :], xc[0:1, :]], axis=1),
         jnp.concatenate([xc[t_tile - 1:t_tile, :], xr[0:1, :], xr[1:2, :]],
                         axis=1)],
        axis=0)                                           # (2, 3C)
    hrow = lax.broadcasted_iota(jnp.int32, (2, 1), 0)
    halo_t = jnp.where(hrow == 0, i * t_tile - 1, (i + 1) * t_tile)
    halo_m = ((halo_t >= 0) & (halo_t < length)).astype(jnp.float32)
    h_halo = jnp.maximum((_dot(halo_x, w1c_ref[...]) + b1) * halo_m, 0.0)

    # ---- conv2 (W -> C): input-side rolls again ------------------------------
    # (At W == 2C the byte traffic of rolling bf16/native-dtype h equals that
    #  of rolling the f32 output, and the input-side variant needs no fixup
    #  matmul at all.)
    h_mm = h.astype(in_dt)                 # native-dtype MXU path
    h_halo_mm = h_halo.astype(in_dt)
    h_prev = pltpu.roll(h_mm, shift=1, axis=0)
    h_prev = jnp.where(row == 0, h_halo_mm[0:1, :], h_prev)
    h_next = pltpu.roll(h_mm, shift=t_tile - 1, axis=0)
    h_next = jnp.where(row == t_tile - 1, h_halo_mm[1:2, :], h_next)

    acc = _dot(h_mm, w2_ref[1]) + b2
    acc = acc + _dot(h_prev, w2_ref[0])
    acc = acc + _dot(h_next, w2_ref[2])

    # residual (identity = raw x, no downsample since stride == 1) + final ReLU
    out = jnp.maximum(acc * mask_c + xc.astype(jnp.float32), 0.0)
    out_ref[0] = out.astype(out_ref.dtype)


# --------------------------- wrapper / tiling --------------------------------


def _vmem_capacity_bytes():
    try:
        return int(pltpu.get_tpu_info().vmem_capacity_bytes)
    except Exception:
        return 64 * 1024 * 1024        # conservative: v7x per-TC VMEM


def _weight_vmem_bytes(C, W, dsize):
    # single-buffered: w1 (3C, W), w2 (3, W, C), biases
    return (3 * C * W + 3 * W * C + W + C) * dsize


def _tile_vmem_bytes(t, C, W, dsize):
    io = 2 * 2 * t * C * dsize                 # double-buffered x-in + out tile
    halo = 2 * 2 * 8 * C * dsize               # double-buffered 8-row halos
    tmp = 3 * t * W * 4 + 2 * t * C * 4        # f32 intermediates (high-water)
    tmp += 2 * t * max(W, C) * dsize           # rolled input copies
    return io + halo + tmp


def _select_t_tile(T, C, W, dsize, vmem_cap):
    """Largest multiple-of-8 divisor of T whose footprint fits the budget."""
    budget = max(int(0.6 * vmem_cap) - _weight_vmem_bytes(C, W, dsize),
                 2 * 1024 * 1024)
    nblk = T // 8
    best = 8
    for nb in range(1, nblk + 1):
        if nblk % nb:
            continue
        t = nb * 8
        if t > 2048:                   # per-step overhead already amortized
            break
        if _tile_vmem_bytes(t, C, W, dsize) <= budget:
            best = t
    return best


def _const_spec(shape):
    """Grid-invariant operand: constant index map, single-buffered if possible."""
    zeros = (0,) * len(shape)
    index_map = lambda b, i, L, _z=zeros: _z
    try:
        return pl.BlockSpec(shape, index_map, pipeline_mode=pl.Buffered(1))
    except TypeError:                  # older BlockSpec without pipeline_mode
        return pl.BlockSpec(shape, index_map)


def conv_block_pallas(x_btc, lengths, w1, b1, w2, b2, *, t_tile=None):
    """x_btc: (B, T, C); lengths: (B,) int; w1: (3, C, W); w2: (3, W, C)."""
    B, T, C = x_btc.shape
    K, Cin, W = w1.shape
    K2, W2, Cout = w2.shape
    assert K == 3 and Cin == C
    assert K2 == 3 and W2 == W and Cout == C      # stride==1 -> n_out == n_embd
    assert T % 8 == 0, "time dimension must be a multiple of 8"

    dsize = x_btc.dtype.itemsize
    vmem_cap = _vmem_capacity_bytes()
    if t_tile is None:
        t_tile = _select_t_tile(T, C, W, dsize, vmem_cap)
    assert T % t_tile == 0 and t_tile % 8 == 0
    n_t = T // t_tile
    tblk = t_tile // 8          # tile size in 8-row blocks
    nblk8 = T // 8              # total number of 8-row blocks

    w1c = w1.reshape(3 * C, W)              # tap-concatenated conv1 weight
    b1 = b1.reshape(1, W)
    b2 = b2.reshape(1, C)
    lengths = lengths.astype(jnp.int32)

    vmem_limit = (_tile_vmem_bytes(t_tile, C, W, dsize)
                  + 2 * _weight_vmem_bytes(C, W, dsize) + (8 << 20))
    vmem_limit = int(min(max(vmem_limit, 32 << 20), int(0.92 * vmem_cap)))

    cost = pl.CostEstimate(
        flops=12 * B * T * C * W,           # 2 convs x (2 * 3 * C * W) per step
        transcendentals=0,
        bytes_accessed=int((2 * B * T * C + 6 * C * W + W + C) * dsize + 4 * B))

    grid_spec = pltpu.PrefetchScalarGridSpec(
        num_scalar_prefetch=1,                      # lengths -> SMEM
        grid=(B, n_t),
        in_specs=[
            # current (1, t_tile, C) tile of x
            pl.BlockSpec((1, t_tile, C), lambda b, i, L: (b, i, 0)),
            # 8-row left / right halo blocks from the neighbouring tiles
            # (clamped at the sequence ends; the kernel zeroes them there)
            pl.BlockSpec((1, 8, C),
                         lambda b, i, L: (b, jnp.maximum(i * tblk - 1, 0), 0)),
            pl.BlockSpec((1, 8, C),
                         lambda b, i, L: (b, jnp.minimum((i + 1) * tblk,
                                                         nblk8 - 1), 0)),
            _const_spec((3 * C, W)),                # w1 (tap-concatenated)
            _const_spec((1, W)),                    # b1
            _const_spec((3, W, C)),                 # w2
            _const_spec((1, C)),                    # b2
        ],
        out_specs=pl.BlockSpec((1, t_tile, C), lambda b, i, L: (b, i, 0)),
    )
    return pl.pallas_call(
        conv_block_kernel,
        out_shape=jax.ShapeDtypeStruct((B, T, C), x_btc.dtype),
        grid_spec=grid_spec,
        compiler_params=pltpu.CompilerParams(
            dimension_semantics=("parallel", "parallel"),
            vmem_limit_bytes=vmem_limit),
        cost_estimate=cost,
    )(lengths, x_btc, x_btc, x_btc, w1c, b1, w2, b2)


# ------------------------------- reference -----------------------------------


def conv_block_ref(x_bct, mask_b1t, w1, b1, w2, b2):
    """Pure-JAX reference in PyTorch layout (B, C, T)."""
    def conv(xc, w, b):  # xc: (B, Cin, T), w: (3, Cin, Cout), b: (Cout,)
        T_ = xc.shape[2]
        xp = jnp.pad(xc, ((0, 0), (0, 0), (1, 1)))
        out = sum(jnp.einsum('bct,co->bot', xp[:, :, k:k + T_], w[k],
                             precision=lax.Precision.HIGHEST)
                  for k in range(3))
        return out + b[None, :, None]

    mf = mask_b1t.astype(x_bct.dtype)
    h = jnp.maximum(conv(x_bct, w1, b1) * mf, 0.0)
    o = conv(h, w2, b2) * mf
    return jnp.maximum(o + x_bct, 0.0)


if __name__ == "__main__":
    # ConvBlock(n_embd=4, kernel_size=3, n_ds_stride=1, expansion_factor=2)
    B, C, T = 2, 4, 16
    width = C * 2          # expansion_factor = 2
    n_out = C              # n_out=None -> n_embd

    key = jax.random.PRNGKey(0)
    kx, kw1, kw2 = jax.random.split(key, 3)

    x_bct = jax.random.normal(kx, (B, C, T), dtype=jnp.float32)   # PyTorch NCL
    lengths = jnp.array([T, 10], dtype=jnp.int32)                 # 2nd seq padded
    mask_b1t = (jnp.arange(T)[None, None, :] < lengths[:, None, None])

    # conv weights (K, Cin, Cout); biases init to 0.0 (as in MaskedConv1D)
    w1 = 0.1 * jax.random.normal(kw1, (3, C, width), dtype=jnp.float32)
    b1 = jnp.zeros((width,), dtype=jnp.float32)
    w2 = 0.1 * jax.random.normal(kw2, (3, width, n_out), dtype=jnp.float32)
    b2 = jnp.zeros((n_out,), dtype=jnp.float32)

    # kernel-side layout: channels-last (B, T, C)
    x_btc = jnp.transpose(x_bct, (0, 2, 1))
    ref_bct = conv_block_ref(x_bct, mask_b1t, w1, b1, w2, b2)

    # t_tile=8 exercises the cross-tile halo path; t_tile=None exercises the
    # auto-selected (single-tile here) path.
    for tt in (8, None):
        out_btc = conv_block_pallas(x_btc, lengths, w1, b1, w2, b2, t_tile=tt)
        out_btc = jax.block_until_ready(out_btc)
        out_bct = jnp.transpose(out_btc, (0, 2, 1))
        assert out_bct.shape == (B, n_out, T)
        err = float(jnp.max(jnp.abs(out_bct - ref_bct)))
        assert jnp.allclose(out_bct, ref_bct, atol=1e-4, rtol=1e-4), (tt, err)

    out_mask = mask_b1t                       # stride == 1 -> mask unchanged
    assert out_mask.dtype == jnp.bool_
    print("KERNEL_OK")
</pallas_src>

<mosaic_0001>
module attributes {stable_mosaic.version = 11 : i64} {
  func.func @conv_block_kernel(%arg0: i32, %arg1: i32, %arg2: memref<2xi32, #tpu.memory_space<smem>>, %arg3: memref<1x8x4xf32, #tpu.memory_space<vmem>>, %arg4: memref<1x8x4xf32, #tpu.memory_space<vmem>>, %arg5: memref<1x8x4xf32, #tpu.memory_space<vmem>>, %arg6: memref<12x8xf32, #tpu.memory_space<vmem>>, %arg7: memref<1x8xf32, #tpu.memory_space<vmem>>, %arg8: memref<3x8x4xf32, #tpu.memory_space<vmem>>, %arg9: memref<1x4xf32, #tpu.memory_space<vmem>>, %arg10: memref<1x8x4xf32, #tpu.memory_space<vmem>>) attributes {dimension_semantics = [#tpu.dimension_semantics<parallel>, #tpu.dimension_semantics<parallel>], iteration_bounds = array<i64: 2, 2>, scalar_prefetch = 1 : i64, scratch_operands = 0 : i64, tpu.core_type = #tpu.core_type<tc>, window_params = [{transform_indices = @transform_0, window_bounds = array<i64: 1, 8, 4>}, {transform_indices = @transform_1, window_bounds = array<i64: 1, 8, 4>}, {transform_indices = @transform_2, window_bounds = array<i64: 1, 8, 4>}, {pipeline_mode = #tpu.pipeline_mode<synchronous>, transform_indices = @transform_3, window_bounds = array<i64: 12, 8>}, {pipeline_mode = #tpu.pipeline_mode<synchronous>, transform_indices = @transform_4, window_bounds = array<i64: 1, 8>}, {pipeline_mode = #tpu.pipeline_mode<synchronous>, transform_indices = @transform_5, window_bounds = array<i64: 3, 8, 4>}, {pipeline_mode = #tpu.pipeline_mode<synchronous>, transform_indices = @transform_6, window_bounds = array<i64: 1, 4>}, {transform_indices = @transform_7, window_bounds = array<i64: 1, 8, 4>}]} {
    %0 = arith.index_cast %arg0 : i32 to index
    %1 = memref.load %arg2[%0] : memref<2xi32, #tpu.memory_space<smem>>
    %c0 = arith.constant 0 : index
    %c0_0 = arith.constant 0 : index
    %c0_1 = arith.constant 0 : index
    %2 = vector.load %arg3[%c0, %c0_0, %c0_1] : memref<1x8x4xf32, #tpu.memory_space<vmem>>, vector<1x8x4xf32>
    %3 = vector.shape_cast %2 : vector<1x8x4xf32> to vector<8x4xf32>
    %c0_2 = arith.constant 0 : index
    %c0_3 = arith.constant 0 : index
    %c0_4 = arith.constant 0 : index
    %4 = vector.load %arg4[%c0_2, %c0_3, %c0_4] : memref<1x8x4xf32, #tpu.memory_space<vmem>>, vector<1x8x4xf32>
    %5 = vector.shape_cast %4 : vector<1x8x4xf32> to vector<8x4xf32>
    %c0_i32 = arith.constant 0 : i32
    %6 = arith.cmpi sgt, %arg1, %c0_i32 : i32
    %7 = arith.extui %6 : i1 to i32
    %8 = arith.sitofp %7 : i32 to f32
    %9 = vector.broadcast %8 : f32 to vector<8x4xf32>
    %10 = arith.mulf %5, %9 : vector<8x4xf32>
    %c0_5 = arith.constant 0 : index
    %c0_6 = arith.constant 0 : index
    %c0_7 = arith.constant 0 : index
    %11 = vector.load %arg5[%c0_5, %c0_6, %c0_7] : memref<1x8x4xf32, #tpu.memory_space<vmem>>, vector<1x8x4xf32>
    %12 = vector.shape_cast %11 : vector<1x8x4xf32> to vector<8x4xf32>
    %c1_i32 = arith.constant 1 : i32
    %13 = arith.cmpi slt, %arg1, %c1_i32 : i32
    %14 = arith.extui %13 : i1 to i32
    %15 = arith.sitofp %14 : i32 to f32
    %16 = vector.broadcast %15 : f32 to vector<8x4xf32>
    %17 = arith.mulf %12, %16 : vector<8x4xf32>
    %18 = tpu.iota {dimensions = array<i32: 0>} : vector<8x1xi32>
    %c8_i32 = arith.constant 8 : i32
    %19 = arith.muli %arg1, %c8_i32 : i32
    %20 = vector.broadcast %19 : i32 to vector<8x1xi32>
    %21 = arith.addi %20, %18 : vector<8x1xi32>
    %22 = vector.broadcast %1 : i32 to vector<8x1xi32>
    %23 = arith.cmpi slt, %21, %22 : vector<8x1xi32>
    %24 = arith.extui %23 : vector<8x1xi1> to vector<8x1xi32>
    %25 = arith.sitofp %24 : vector<8x1xi32> to vector<8x1xf32>
    %c0_8 = arith.constant 0 : index
    %c0_9 = arith.constant 0 : index
    %26 = vector.load %arg7[%c0_8, %c0_9] : memref<1x8xf32, #tpu.memory_space<vmem>>, vector<1x8xf32>
    %c0_10 = arith.constant 0 : index
    %c0_11 = arith.constant 0 : index
    %27 = vector.load %arg9[%c0_10, %c0_11] : memref<1x4xf32, #tpu.memory_space<vmem>>, vector<1x4xf32>
    %c0_12 = arith.constant 0 : index
    %c0_13 = arith.constant 0 : index
    %28 = vector.load %arg6[%c0_12, %c0_13] : memref<12x8xf32, #tpu.memory_space<vmem>>, vector<4x8xf32>
    %c4 = arith.constant 4 : index
    %c0_14 = arith.constant 0 : index
    %29 = vector.load %arg6[%c4, %c0_14] : memref<12x8xf32, #tpu.memory_space<vmem>>, vector<4x8xf32>
    %c8 = arith.constant 8 : index
    %c0_15 = arith.constant 0 : index
    %30 = vector.load %arg6[%c8, %c0_15] : memref<12x8xf32, #tpu.memory_space<vmem>>, vector<4x8xf32>
    %c1_i32_16 = arith.constant 1 : i32
    %31 = tpu.dynamic_rotate %3 by %c1_i32_16 dim 0 : vector<8x4xf32>, i32 -> vector<8x4xf32>
    %c0_i32_17 = arith.constant 0 : i32
    %32 = vector.broadcast %c0_i32_17 : i32 to vector<8x1xi32>
    %33 = arith.cmpi eq, %18, %32 : vector<8x1xi32>
    %34 = vector.extract_strided_slice %10 {offsets = [7, 0], sizes = [1, 4], strides = [1, 1]} : vector<8x4xf32> to vector<1x4xf32>
    %35 = vector.shape_cast %33 : vector<8x1xi1> to vector<8x1xi1>
    %36 = vector.broadcast %35 : vector<8x1xi1> to vector<8x4xi1>
    %37 = vector.shape_cast %34 : vector<1x4xf32> to vector<1x4xf32>
    %38 = vector.broadcast %37 : vector<1x4xf32> to vector<8x4xf32>
    %39 = arith.select %36, %38, %31 : vector<8x4xi1>, vector<8x4xf32>
    %c7_i32 = arith.constant 7 : i32
    %40 = tpu.dynamic_rotate %3 by %c7_i32 dim 0 : vector<8x4xf32>, i32 -> vector<8x4xf32>
    %c7_i32_18 = arith.constant 7 : i32
    %41 = vector.broadcast %c7_i32_18 : i32 to vector<8x1xi32>
    %42 = arith.cmpi eq, %18, %41 : vector<8x1xi32>
    %43 = vector.extract_strided_slice %17 {offsets = [0, 0], sizes = [1, 4], strides = [1, 1]} : vector<8x4xf32> to vector<1x4xf32>
    %44 = vector.shape_cast %42 : vector<8x1xi1> to vector<8x1xi1>
    %45 = vector.broadcast %44 : vector<8x1xi1> to vector<8x4xi1>
    %46 = vector.shape_cast %43 : vector<1x4xf32> to vector<1x4xf32>
    %47 = vector.broadcast %46 : vector<1x4xf32> to vector<8x4xf32>
    %48 = arith.select %45, %47, %40 : vector<8x4xi1>, vector<8x4xf32>
    %cst = arith.constant dense<0.000000e+00> : vector<8x8xf32>
    %49 = tpu.matmul %3, %29, %cst {dimension_numbers = #tpu.dot_dimension_numbers<[1], [0], [0], [1], [0, 0, 1, 1], [], []>, precision = #tpu.contract_precision<fp32>} : vector<8x4xf32>, vector<4x8xf32>, vector<8x8xf32> -> vector<8x8xf32>
    %50 = vector.broadcast %26 : vector<1x8xf32> to vector<8x8xf32>
    %51 = arith.addf %49, %50 : vector<8x8xf32>
    %cst_19 = arith.constant dense<0.000000e+00> : vector<8x8xf32>
    %52 = tpu.matmul %39, %28, %cst_19 {dimension_numbers = #tpu.dot_dimension_numbers<[1], [0], [0], [1], [0, 0, 1, 1], [], []>, precision = #tpu.contract_precision<fp32>} : vector<8x4xf32>, vector<4x8xf32>, vector<8x8xf32> -> vector<8x8xf32>
    %53 = arith.addf %51, %52 : vector<8x8xf32>
    %cst_20 = arith.constant dense<0.000000e+00> : vector<8x8xf32>
    %54 = tpu.matmul %48, %30, %cst_20 {dimension_numbers = #tpu.dot_dimension_numbers<[1], [0], [0], [1], [0, 0, 1, 1], [], []>, precision = #tpu.contract_precision<fp32>} : vector<8x4xf32>, vector<4x8xf32>, vector<8x8xf32> -> vector<8x8xf32>
    %55 = arith.addf %53, %54 : vector<8x8xf32>
    %56 = vector.broadcast %25 : vector<8x1xf32> to vector<8x8xf32>
    %57 = arith.mulf %55, %56 : vector<8x8xf32>
    %cst_21 = arith.constant 0.000000e+00 : f32
    %58 = vector.broadcast %cst_21 : f32 to vector<8x8xf32>
    %59 = arith.maximumf %57, %58 : vector<8x8xf32>
    %60 = vector.extract_strided_slice %10 {offsets = [6, 0], sizes = [1, 4], strides = [1, 1]} : vector<8x4xf32> to vector<1x4xf32>
    %61 = vector.extract_strided_slice %10 {offsets = [7, 0], sizes = [1, 4], strides = [1, 1]} : vector<8x4xf32> to vector<1x4xf32>
    %62 = vector.extract_strided_slice %3 {offsets = [0, 0], sizes = [1, 4], strides = [1, 1]} : vector<8x4xf32> to vector<1x4xf32>
    %63 = tpu.concatenate %60, %61, %62 in 1 : vector<1x4xf32>, vector<1x4xf32>, vector<1x4xf32> -> vector<1x12xf32>
    %64 = vector.extract_strided_slice %3 {offsets = [7, 0], sizes = [1, 4], strides = [1, 1]} : vector<8x4xf32> to vector<1x4xf32>
    %65 = vector.extract_strided_slice %17 {offsets = [0, 0], sizes = [1, 4], strides = [1, 1]} : vector<8x4xf32> to vector<1x4xf32>
    %66 = vector.extract_strided_slice %17 {offsets = [1, 0], sizes = [1, 4], strides = [1, 1]} : vector<8x4xf32> to vector<1x4xf32>
    %67 = tpu.concatenate %64, %65, %66 in 1 : vector<1x4xf32>, vector<1x4xf32>, vector<1x4xf32> -> vector<1x12xf32>
    %68 = tpu.concatenate %63, %67 in 0 : vector<1x12xf32>, vector<1x12xf32> -> vector<2x12xf32>
    %69 = tpu.iota {dimensions = array<i32: 0>} : vector<2x1xi32>
    %c0_i32_22 = arith.constant 0 : i32
    %70 = vector.broadcast %c0_i32_22 : i32 to vector<2x1xi32>
    %71 = arith.cmpi eq, %69, %70 : vector<2x1xi32>
    %c8_i32_23 = arith.constant 8 : i32
    %72 = arith.muli %arg1, %c8_i32_23 : i32
    %c1_i32_24 = arith.constant 1 : i32
    %73 = arith.subi %72, %c1_i32_24 : i32
    %c1_i32_25 = arith.constant 1 : i32
    %74 = arith.addi %arg1, %c1_i32_25 : i32
    %c8_i32_26 = arith.constant 8 : i32
    %75 = arith.muli %74, %c8_i32_26 : i32
    %76 = vector.broadcast %73 : i32 to vector<2x1xi32>
    %77 = vector.broadcast %75 : i32 to vector<2x1xi32>
    %78 = arith.select %71, %76, %77 : vector<2x1xi1>, vector<2x1xi32>
    %c0_i32_27 = arith.constant 0 : i32
    %79 = vector.broadcast %c0_i32_27 : i32 to vector<2x1xi32>
    %80 = arith.cmpi sge, %78, %79 : vector<2x1xi32>
    %81 = vector.broadcast %1 : i32 to vector<2x1xi32>
    %82 = arith.cmpi slt, %78, %81 : vector<2x1xi32>
    %83 = arith.andi %80, %82 : vector<2x1xi1>
    %84 = arith.extui %83 : vector<2x1xi1> to vector<2x1xi32>
    %85 = arith.sitofp %84 : vector<2x1xi32> to vector<2x1xf32>
    %c0_28 = arith.constant 0 : index
    %c0_29 = arith.constant 0 : index
    %86 = vector.load %arg6[%c0_28, %c0_29] : memref<12x8xf32, #tpu.memory_space<vmem>>, vector<12x8xf32>
    %cst_30 = arith.constant dense<0.000000e+00> : vector<2x8xf32>
    %87 = tpu.matmul %68, %86, %cst_30 {dimension_numbers = #tpu.dot_dimension_numbers<[1], [0], [0], [1], [0, 0, 1, 1], [], []>, precision = #tpu.contract_precision<fp32>} : vector<2x12xf32>, vector<12x8xf32>, vector<2x8xf32> -> vector<2x8xf32>
    %88 = vector.broadcast %26 : vector<1x8xf32> to vector<2x8xf32>
    %89 = arith.addf %87, %88 : vector<2x8xf32>
    %90 = vector.broadcast %85 : vector<2x1xf32> to vector<2x8xf32>
    %91 = arith.mulf %89, %90 : vector<2x8xf32>
    %cst_31 = arith.constant 0.000000e+00 : f32
    %92 = vector.broadcast %cst_31 : f32 to vector<2x8xf32>
    %93 = arith.maximumf %91, %92 : vector<2x8xf32>
    %c1_i32_32 = arith.constant 1 : i32
    %94 = tpu.dynamic_rotate %59 by %c1_i32_32 dim 0 : vector<8x8xf32>, i32 -> vector<8x8xf32>
    %c0_i32_33 = arith.constant 0 : i32
    %95 = vector.broadcast %c0_i32_33 : i32 to vector<8x1xi32>
    %96 = arith.cmpi eq, %18, %95 : vector<8x1xi32>
    %97 = vector.extract_strided_slice %93 {offsets = [0, 0], sizes = [1, 8], strides = [1, 1]} : vector<2x8xf32> to vector<1x8xf32>
    %98 = vector.shape_cast %96 : vector<8x1xi1> to vector<8x1xi1>
    %99 = vector.broadcast %98 : vector<8x1xi1> to vector<8x8xi1>
    %100 = vector.shape_cast %97 : vector<1x8xf32> to vector<1x8xf32>
    %101 = vector.broadcast %100 : vector<1x8xf32> to vector<8x8xf32>
    %102 = arith.select %99, %101, %94 : vector<8x8xi1>, vector<8x8xf32>
    %c7_i32_34 = arith.constant 7 : i32
    %103 = tpu.dynamic_rotate %59 by %c7_i32_34 dim 0 : vector<8x8xf32>, i32 -> vector<8x8xf32>
    %c7_i32_35 = arith.constant 7 : i32
    %104 = vector.broadcast %c7_i32_35 : i32 to vector<8x1xi32>
    %105 = arith.cmpi eq, %18, %104 : vector<8x1xi32>
    %106 = vector.extract_strided_slice %93 {offsets = [1, 0], sizes = [1, 8], strides = [1, 1]} : vector<2x8xf32> to vector<1x8xf32>
    %107 = vector.shape_cast %105 : vector<8x1xi1> to vector<8x1xi1>
    %108 = vector.broadcast %107 : vector<8x1xi1> to vector<8x8xi1>
    %109 = vector.shape_cast %106 : vector<1x8xf32> to vector<1x8xf32>
    %110 = vector.broadcast %109 : vector<1x8xf32> to vector<8x8xf32>
    %111 = arith.select %108, %110, %103 : vector<8x8xi1>, vector<8x8xf32>
    %c1 = arith.constant 1 : index
    %c0_36 = arith.constant 0 : index
    %c0_37 = arith.constant 0 : index
    %112 = vector.load %arg8[%c1, %c0_36, %c0_37] : memref<3x8x4xf32, #tpu.memory_space<vmem>>, vector<1x8x4xf32>
    %113 = vector.shape_cast %112 : vector<1x8x4xf32> to vector<8x4xf32>
    %cst_38 = arith.constant dense<0.000000e+00> : vector<8x4xf32>
    %114 = tpu.matmul %59, %113, %cst_38 {dimension_numbers = #tpu.dot_dimension_numbers<[1], [0], [0], [1], [0, 0, 1, 1], [], []>, precision = #tpu.contract_precision<fp32>} : vector<8x8xf32>, vector<8x4xf32>, vector<8x4xf32> -> vector<8x4xf32>
    %115 = vector.broadcast %27 : vector<1x4xf32> to vector<8x4xf32>
    %116 = arith.addf %114, %115 : vector<8x4xf32>
    %c0_39 = arith.constant 0 : index
    %c0_40 = arith.constant 0 : index
    %c0_41 = arith.constant 0 : index
    %117 = vector.load %arg8[%c0_39, %c0_40, %c0_41] : memref<3x8x4xf32, #tpu.memory_space<vmem>>, vector<1x8x4xf32>
    %118 = vector.shape_cast %117 : vector<1x8x4xf32> to vector<8x4xf32>
    %cst_42 = arith.constant dense<0.000000e+00> : vector<8x4xf32>
    %119 = tpu.matmul %102, %118, %cst_42 {dimension_numbers = #tpu.dot_dimension_numbers<[1], [0], [0], [1], [0, 0, 1, 1], [], []>, precision = #tpu.contract_precision<fp32>} : vector<8x8xf32>, vector<8x4xf32>, vector<8x4xf32> -> vector<8x4xf32>
    %120 = arith.addf %116, %119 : vector<8x4xf32>
    %c2 = arith.constant 2 : index
    %c0_43 = arith.constant 0 : index
    %c0_44 = arith.constant 0 : index
    %121 = vector.load %arg8[%c2, %c0_43, %c0_44] : memref<3x8x4xf32, #tpu.memory_space<vmem>>, vector<1x8x4xf32>
    %122 = vector.shape_cast %121 : vector<1x8x4xf32> to vector<8x4xf32>
    %cst_45 = arith.constant dense<0.000000e+00> : vector<8x4xf32>
    %123 = tpu.matmul %111, %122, %cst_45 {dimension_numbers = #tpu.dot_dimension_numbers<[1], [0], [0], [1], [0, 0, 1, 1], [], []>, precision = #tpu.contract_precision<fp32>} : vector<8x8xf32>, vector<8x4xf32>, vector<8x4xf32> -> vector<8x4xf32>
    %124 = arith.addf %120, %123 : vector<8x4xf32>
    %125 = vector.broadcast %25 : vector<8x1xf32> to vector<8x4xf32>
    %126 = arith.mulf %124, %125 : vector<8x4xf32>
    %127 = arith.addf %126, %3 : vector<8x4xf32>
    %cst_46 = arith.constant 0.000000e+00 : f32
    %128 = vector.broadcast %cst_46 : f32 to vector<8x4xf32>
    %129 = arith.maximumf %127, %128 : vector<8x4xf32>
    %c0_47 = arith.constant 0 : index
    %c0_48 = arith.constant 0 : index
    %c0_49 = arith.constant 0 : index
    %130 = vector.load %arg10[%c0_47, %c0_48, %c0_49] : memref<1x8x4xf32, #tpu.memory_space<vmem>>, vector<1x8x4xf32>
    %131 = vector.shape_cast %130 : vector<1x8x4xf32> to vector<8x4xf32>
    %132 = vector.shape_cast %129 : vector<8x4xf32> to vector<1x8x4xf32>
    tpu.vector_store %arg10[%c0_47, %c0_48, %c0_49], %132 {strides = array<i32>} : memref<1x8x4xf32, #tpu.memory_space<vmem>>, vector<1x8x4xf32>,
    return
  }
  func.func @transform_0(%arg0: i32, %arg1: i32, %arg2: memref<2xi32, #tpu.memory_space<smem>>) -> (i32, i32, i32) {
    %c0_i32 = arith.constant 0 : i32
    %c0_i32_0 = arith.constant 0 : i32
    return %arg0, %arg1, %c0_i32 : i32, i32, i32
  }
  func.func @transform_1(%arg0: i32, %arg1: i32, %arg2: memref<2xi32, #tpu.memory_space<smem>>) -> (i32, i32, i32) {
    %c1_i32 = arith.constant 1 : i32
    %0 = arith.muli %arg1, %c1_i32 : i32
    %c1_i32_0 = arith.constant 1 : i32
    %1 = arith.subi %0, %c1_i32_0 : i32
    %c0_i32 = arith.constant 0 : i32
    %2 = arith.maxsi %1, %c0_i32 : i32
    %c0_i32_1 = arith.constant 0 : i32
    %c0_i32_2 = arith.constant 0 : i32
    return %arg0, %2, %c0_i32_1 : i32, i32, i32
  }
  func.func @transform_2(%arg0: i32, %arg1: i32, %arg2: memref<2xi32, #tpu.memory_space<smem>>) -> (i32, i32, i32) {
    %c1_i32 = arith.constant 1 : i32
    %0 = arith.addi %arg1, %c1_i32 : i32
    %c1_i32_0 = arith.constant 1 : i32
    %1 = arith.muli %0, %c1_i32_0 : i32
    %c1_i32_1 = arith.constant 1 : i32
    %2 = arith.minsi %1, %c1_i32_1 : i32
    %c0_i32 = arith.constant 0 : i32
    %c0_i32_2 = arith.constant 0 : i32
    return %arg0, %2, %c0_i32 : i32, i32, i32
  }
  func.func @transform_3(%arg0: i32, %arg1: i32, %arg2: memref<2xi32, #tpu.memory_space<smem>>) -> (i32, i32) {
    %c0_i32 = arith.constant 0 : i32
    %c0_i32_0 = arith.constant 0 : i32
    %c0_i32_1 = arith.constant 0 : i32
    return %c0_i32, %c0_i32_0 : i32, i32
  }
  func.func @transform_4(%arg0: i32, %arg1: i32, %arg2: memref<2xi32, #tpu.memory_space<smem>>) -> (i32, i32) {
    %c0_i32 = arith.constant 0 : i32
    %c0_i32_0 = arith.constant 0 : i32
    %c0_i32_1 = arith.constant 0 : i32
    return %c0_i32, %c0_i32_0 : i32, i32
  }
  func.func @transform_5(%arg0: i32, %arg1: i32, %arg2: memref<2xi32, #tpu.memory_space<smem>>) -> (i32, i32, i32) {
    %c0_i32 = arith.constant 0 : i32
    %c0_i32_0 = arith.constant 0 : i32
    %c0_i32_1 = arith.constant 0 : i32
    %c0_i32_2 = arith.constant 0 : i32
    return %c0_i32, %c0_i32_0, %c0_i32_1 : i32, i32, i32
  }
  func.func @transform_6(%arg0: i32, %arg1: i32, %arg2: memref<2xi32, #tpu.memory_space<smem>>) -> (i32, i32) {
    %c0_i32 = arith.constant 0 : i32
    %c0_i32_0 = arith.constant 0 : i32
    %c0_i32_1 = arith.constant 0 : i32
    return %c0_i32, %c0_i32_0 : i32, i32
  }
  func.func @transform_7(%arg0: i32, %arg1: i32, %arg2: memref<2xi32, #tpu.memory_space<smem>>) -> (i32, i32, i32) {
    %c0_i32 = arith.constant 0 : i32
    %c0_i32_0 = arith.constant 0 : i32
    return %arg0, %arg1, %c0_i32 : i32, i32, i32
  }
}

</mosaic_0001>

<bundles_post_ra>
// kernel: tpu_custom_call.1
= control target key start
LH: loop header
LB: loop body
LE: loop exit
PB: predicated region body
PF: predicated region fallthrough
CT: control target
= control target key end

     0   :  { %s4788_s0 = inlined_call_operand.vmem [shape: s32[2], index: 0, kind: input, shape index: {}]   ;;  %s4789_s1 = inlined_call_operand.vmem [shape: f32[2,16,4], index: 1, kind: input, shape index: {}]   ;;  %s4790_s2 = inlined_call_operand.vmem [shape: f32[2,16,4], index: 2, kind: input, shape index: {}]   ;;  %s4791_s3 = inlined_call_operand.vmem [shape: f32[2,16,4], index: 3, kind: input, shape index: {}]   ;;  %s4792_s4 = inlined_call_operand.vmem [shape: f32[12,8], index: 4, kind: input, shape index: {}]   ;;  %s4793_s5 = inlined_call_operand.vmem [shape: f32[1,8], index: 5, kind: input, shape index: {}]   ;;  %s4794_s6 = inlined_call_operand.vmem [shape: f32[3,8,4], index: 6, kind: input, shape index: {}]   ;;  %s4795_s7 = inlined_call_operand.vmem [shape: f32[1,4], index: 7, kind: input, shape index: {}]   ;;  %s4796_s8 = inlined_call_operand.vmem [shape: f32[2,16,4], index: 8, kind: output, shape index: {}]  }
   0x1   :  { %s13_s29 = sshll.u32 %s4788_s0, 4  ;;  %s14_s29 = int_to_ptr.vmem [resolvable:$true] %s13_s29 }
   0x2   :  { %s4237_s30 = scalar_lea.vmem %s14_s29, 16  ;;  %p4242_p1 = scmp.lt.s32.totalorder %s14_s29, %s14_s29 }
   0x3   :  { %p4238_p0 = scmp.ne.s32.totalorder %s14_s29, %s4237_s30  ;;  %p4243_p2 = scmp.lt.s32.totalorder %s4237_s30, %s4237_s30 }
   0x5   :  { %p4244_p3 = por %p4243_p2, %p4242_p1 }
   0x7   :  { %p4245_p4 = pnand %p4244_p3, %p4238_p0 }
   0x9   :  { %4248 = shalt.err (!%p4245_p4)  }
   0xa   :  { %s4291_s9 = smov [#allocation3]  }
   0xb   :  { %16 = dma.vmem_to_smem %s14_s29, 16, %s4291_s9, [#allocation2] }
   0xc   :  { %4269 = dma.done.wait [#allocation2], 16 }
   0xd   :  { %4270 = vsyncadd [#allocation2], 4294967280 }
   0xe   :  { %18 = sfence }
   0xf   :  { %s4344_s10 = smov 0   ;;  %s4346_s11 = smov 0  }
  0x10   :  { %s4348_s12 = smov 0   ;;  %s4350_s0 = smov 0  }
  0x11   :  { %s4352_s13 = smov 0  }
  0x12 LB: > { %s33_s14 = sadd.s32 1, %s4281_s12  ;;  %s36_s15 = sadd.s32 1, %s4285_s0  ;;  %s4289_s13 = sphi %s4352_s13, %s24_s13   ;;  %s4285_s0 = sphi %s4350_s0, %s4801_s0   ;;  %s4281_s12 = sphi %s4348_s12, %s4800_s12   ;;  %s4277_s11 = sphi %s4346_s11, %s4799_s11   ;;  %s4273_s10 = sphi %s4344_s10, %s4798_s10  }
  0x13   : > { %p34_p5 = scmp.ge.s32.totalorder %s33_s14, 2  ;;  %p3847_p6 = scmp.ge.s32.totalorder %s4289_s13, 1 }
  0x14   : > { %p317_p7 = scmp.lt.s32.totalorder %s4289_s13, 5 }
  0x15   : > { %s4803_s14 = smov (%p34_p5, %s33_s14), 0  ;;  %s4805_s15 = smov (!%p34_p5, %s36_s15), %s4285_s0 }
  0x16   : > { %p318_p8 = pnand %p3847_p6, %p317_p7  ;;  %p38_p9 = scmp.ge.s32.totalorder %s4805_s15, 2 }
  0x17   : > { %p377_p10 = scmp.lt.s32.totalorder (!%p318_p8), %s4277_s11, 1  ;;  %s3850_s16 = sadd.s32 (!%p318_p8), 4294967295, %s4273_s10 }
  0x18   : > { %s4807_s15 = smov (%p38_p9, %s4805_s15), 0  ;;  %321 = sbr.rel (%p318_p8) target bundleno = 628 (0x274), region = 48 }
  0x19   : > { %p386_p11 = scmp.gt.s32.totalorder (!%p318_p8), %s3850_s16, 0  ;;  %p3851_p12 = scmp.lt.s32.totalorder (!%p318_p8), %s3850_s16, 1 }
  0x1a   : > { %p424_p13 = scmp.gt.s32.totalorder (!%p318_p8), %s4273_s10, 0  ;;  %p379_p0 = scmp.lt.s32.totalorder (!%p318_p8), %s4273_s10, 1 }
  0x1b   : > { %s399_s9 = sadd.s32 (!%p318_p8), 1, %s4273_s10  ;;  %s4295_s28 = smov (!%p318_p8), 8  }
  0x1c   : > { %p4426_p1 = scmp.lt.s32.totalorder (!%p318_p8), %s399_s9, 1 }
  0x1d   : > { %v447_v0 = vld [vmem:[%s4792_s4 + $0x4] sm:$0xf]  ;;  %vm477_vm0 = vcmask 1043456   ;;  %v4292_v1 = vmov 0.0   ;;  %s378_s19 = scalar_select %p377_p10, %s4277_s11, 1  ;;  %vm4293_vm1 = vmmov 0   ;;  %v435_v4 = vlaneseq }
  0x1e   : > { %3970 = vmatprep.subr.mxu0 %v4292_v1  ;;  %v479_v2 = vsel %vm477_vm0, %v447_v0, 0  ;;  %3975 = vmatprep.subr.mxu1 %v4292_v1  ;;  %s387_s20 = scalar_select %p386_p11, %s3850_s16, 0  ;;  %v446_v6 = vld [vmem:[%s4792_s4] sm:$0xf]  ;;  %vm473_vm2 = vcmask 31744   ;;  %vm1845_vm5 = vcmask 64512  }
  0x1f   : > { %v4387_v3 = vand.u32 4294901760, %v479_v2  ;;  %3972 = vmatprep.mubr.msk.f32.mxu0 %vm4293_vm1, %v4292_v1  ;;  %3977 = vmatprep.mubr.msk.f32.mxu1 %vm4293_vm1, %v4292_v1  ;;  %s4393_s21 = sshll.u32 %s378_s19, 1  ;;  %v4407_v8 = vshrl.u32 %v435_v4, 7  ;;  %v931_v10 = vsel %vm477_vm0, %v446_v6, 0  ;;  %s4811_s9 = smov (!%p4426_p1, %s399_s9), 1  ;;  %v1877_v54 = vld [vmem:[%s4792_s4] sm:$0xff] }
  0x20   : > { %s4809_s20 = smov (!%p3851_p12, %s387_s20), 1  ;;  %v4424_v16 = vand.u32 4294901760, %v931_v10  ;;  %v448_v21 = vld [vmem:[%s4792_s4 + $0x8] sm:$0xf]  ;;  %s4813_s9 = smov (!%p4426_p1, %s4811_s9), 1  ;;  %v4533_v58 = vand.u32 4294901760, %v1877_v54 }
  0x21   : > { %3971 = vmatpush3.msra.mxu0 %v4387_v3  ;;  %v4398_v5 = vsub.f32 %v479_v2, %v4387_v3  ;;  %s425_s24 = scalar_select %p424_p13, 1, 0  ;;  %v455_v15 = vsub.s32 7, %v4407_v8  ;;  %vm450_vm3 = vcmp.eq.s32.totalorder %v4407_v8, 0  ;;  %v1384_v28 = vsel %vm477_vm0, %v448_v21, 0 }
  0x22   : > { %3980 = vmatprep.subr.mxu0 %v4292_v1  ;;  %s393_s25 = sadd.s32 %s4809_s20, %s4393_s21  ;;  %s4294_s20 = smov 4   ;;  %v4442_v19 = vsub.f32 %v931_v10, %v4424_v16  ;;  %v464_v33 = vsub.s32 0, %v4407_v8  ;;  %v4481_v36 = vand.u32 4294901760, %v1384_v28  ;;  %vm459_vm4 = vcmp.eq.s32.totalorder %v4407_v8, 7 }
  0x23   : > { %v590_v7 = vand.u32 4294901760, %v4398_v5  ;;  %s3857_s26 = sshll.u32 %s393_s25, 3  ;;  %s426_s27 = scvt.s32.f32 %s425_s24  ;;  %v4545_v61 = vsub.f32 %v1877_v54, %v4533_v58  ;;  %vm1864_vm6 = vcmask 1040384   ;;  %vm1878_vm7 = vcmask 97280  }
  0x24   : > { %s395_s30 = scalar_lea.vmem %s4790_s2, %s3857_s26  ;;  %v1042_v27 = vand.u32 4294901760, %v4442_v19  ;;  %v4496_v46 = vsub.f32 %v1384_v28, %v4481_v36  ;;  %s4654_s26 = sld [smem:[#allocation3 + %s4277_s11]] }
  0x25   : > { %v591_v9 = vsub.f32 %v4398_v5, %v590_v7  ;;  %v423_v11 = vld [vmem:[%s395_s30] sm:$0xff]  ;;  %v427_v12 = vstv %s426_s27  ;;  %s380_s16 = scalar_select %p379_p0, %s4273_s10, 1  ;;  %v1997_v63 = vand.u32 4294901760, %v4545_v61 }
  0x26   : > { %v4418_v14 = vmul.f32 %v427_v12, %v423_v11  ;;  %s431_s27 = scalar_select %p379_p0, 1, 0  ;;  %v1043_v37 = vsub.f32 %v4442_v19, %v1042_v27  ;;  %v4509_v51 = vand.u32 4294901760, %v4496_v46 }
  0x27   : > { %v592_v13 = vand.u32 4294901760, %v591_v9  ;;  %s382_s18 = sadd.s32 %s4393_s21, %s380_s16  ;;  %s407_s30 = sadd.s32 %s4393_s21, %s4813_s9  ;;  %v1998_v2 = vsub.f32 %v4545_v61, %v1997_v63 }
  0x28   : > { %v1836_v17 = vrot.slane %v4418_v14, 1  ;;  %s4433_s19 = sshll.u32 %s382_s18, 3  ;;  %v456_v18 = vrot.slane %v4418_v14, %v455_v15  ;;  %s432_s29 = scvt.s32.f32 %s431_s27  ;;  %v1044_v47 = vand.u32 4294901760, %v1043_v37  ;;  %v1496_v55 = vsub.f32 %v4496_v46, %v4509_v51 }
  0x29   : > { %3976 = vmatpush3.msra.mxu1 %v592_v13  ;;  %s384_s24 = scalar_lea.vmem %s4789_s1, %s4433_s19  ;;  %s3862_s16 = sshll.u32 %s407_s30, 3 }
  0x2a   : > { %3985 = vmatprep.subr.mxu1 %v4292_v1  ;;  %1837 = vrot.lane.b32.xlu0 %v1836_v17, %s4294_s20  ;;  %v4444_v20 = vld [vmem:[%s384_s24] sm:$0xff]  ;;  %v433_v31 = vstv %s432_s29  ;;  %s409_s21 = scalar_lea.vmem %s4791_s3, %s3862_s16  ;;  %v1497_v59 = vand.u32 4294901760, %v1496_v55  ;;  %s4657_s27 = sshll.u32 %s4273_s10, 3 }
  0x2b   : > { %v1840_v22 = vrot.slane %v4444_v20, 2  ;;  %v475_v23 = vsel %vm473_vm2, %v4444_v20, 0  ;;  %v449_v24 = vrot.slane %v4444_v20, 7  ;;  %v429_v35 = vld [vmem:[%s409_s21] sm:$0xff]  ;;  %v458_v40 = vrot.slane %v4444_v20, 1  ;;  %s3879_s29 = sadd.s32 8, %s4657_s27 }
  0x2c   : > { %v4460_v25 = vand.u32 4294901760, %v475_v23  ;;  %v434_v38 = vmul.f32 %v433_v31, %v429_v35 }
  0x2d   : > { %1841 = vrot.lane.b32.xlu1 %v1840_v22, %s4295_s28  ;;  %v457_v26 = vsel %vm450_vm3, %v456_v18, %v449_v24 }
  0x2e   : > { %v548_v29 = vsub.f32 %v475_v23, %v4460_v25  ;;  %3978 = vmatmul.mubr.f32.vlgmr.msra.gmra.mxu1 %v4460_v25  ;;  %v928_v30 = vsel %vm473_vm2, %v457_v26, 0  ;;  %v465_v42 = vrot.slane %v434_v38, %v464_v33  ;;  %v1848_v43 = vrot.slane %v434_v38, 1 }
  0x2f   : > { %3986 = vmatpush3.msra.mxu1 %v4387_v3  ;;  %3987 = vmatprep.mubr.msk.f32.mxu1 %vm4293_vm1, %v4292_v1  ;;  %v4474_v32 = vand.u32 4294901760, %v928_v30  ;;  %v1852_v44 = vrot.slane %v434_v38, 2 }
  0x30   : > { %v549_v34 = vand.u32 4294901760, %v548_v29  ;;  %3995 = vmatprep.subr.mxu1 %v4292_v1  ;;  %1849 = vrot.lane.b32.xlu0 %v1848_v43, %s4294_s20  ;;  %v466_v48 = vsel %vm459_vm4, %v465_v42, %v458_v40  ;;  %v4650_v40 = vld [vmem:[%s4793_s5] ss:$0 sm:$0xff]  ;;  %s420_s20 = scalar_lea.vmem %s4796_s8, %s4433_s19 }
  0x31   : > { %v1000_v41 = vsub.f32 %v928_v30, %v4474_v32  ;;  %1853 = vrot.lane.b32.xlu1 %v1852_v44, %s4295_s28  ;;  %v1381_v50 = vsel %vm473_vm2, %v466_v48, 0  ;;  %s3868_s28 = sadd.s32 4294967295, %s4657_s27 }
  0x32   : > { %v550_v39 = vsub.f32 %v548_v29, %v549_v34  ;;  %3988 = vmatmul.mubr.f32.vlgmr.msra.gmra.mxu1 %v549_v34  ;;  %v4515_v53 = vand.u32 4294901760, %v1381_v50 }
  0x33   : > { %3996 = vmatpush3.msra.mxu1 %v4387_v3  ;;  %3997 = vmatprep.mubr.msk.f32.mxu1 %vm4293_vm1, %v4292_v1  ;;  %v1001_v49 = vand.u32 4294901760, %v1000_v41  ;;  %v1999_v3 = vand.u32 4294901760, %v1998_v2 }
  0x34   : > { %v551_v45 = vand.u32 4294901760, %v550_v39  ;;  %4005 = vmatprep.subr.mxu1 %v4292_v1  ;;  %v1453_v57 = vsub.f32 %v1381_v50, %v4515_v53 }
  0x35   : > { %v1002_v52 = vsub.f32 %v1000_v41, %v1001_v49 }
  0x36   : > { %3973 = vmatmul.mubr.f32.vlgmr.msra.gmra.mxu0 %v551_v45  ;;  %3998 = vmatmul.mubr.f32.vlgmr.msra.gmra.mxu1 %v4460_v25  ;;  %v1454_v60 = vand.u32 4294901760, %v1453_v57 }
  0x37   : > { %3981 = vmatpush3.msra.mxu0 %v4398_v5  ;;  %3982 = vmatprep.mubr.msk.f32.mxu0 %vm4293_vm1, %v4292_v1  ;;  %v1003_v56 = vand.u32 4294901760, %v1002_v52 }
  0x38   : > { %3990 = vmatprep.subr.mxu0 %v4292_v1  ;;  %4006 = vmatpush3.msra.mxu1 %v1044_v47  ;;  %v1455_v62 = vsub.f32 %v1453_v57, %v1454_v60 }
  0x39   : > { %4007 = vmatprep.mubr.msk.f32.mxu1 %vm4293_vm1, %v4292_v1  ;;  %4015 = vmatprep.subr.mxu1 %v4292_v1 }
  0x3a   : > { %3983 = vmatmul.mubr.f32.vlgmr.msra.gmra.mxu0 %v548_v29  ;;  %4008 = vmatmul.mubr.f32.vlgmr.msra.gmra.mxu1 %v4474_v32  ;;  %v1456_v0 = vand.u32 4294901760, %v1455_v62 }
  0x3b   : > { %3991 = vmatpush3.msra.mxu0 %v590_v7  ;;  %3992 = vmatprep.mubr.msk.f32.mxu0 %vm4293_vm1, %v4292_v1  ;;  %v3871_v7 = vld [vmem:[%s4794_s6 + $0x8] sm:$0xff] }
  0x3c   : > { %4000 = vmatprep.subr.mxu0 %v4292_v1  ;;  %4016 = vmatpush3.msra.mxu1 %v4424_v16  ;;  %v4603_v12 = vand.u32 4294901760, %v3871_v7 }
  0x3d   : > { %4017 = vmatprep.mubr.msk.f32.mxu1 %vm4293_vm1, %v4292_v1  ;;  %4025 = vmatprep.subr.mxu1 %v4292_v1 }
  0x3e   : > { %3993 = vmatmul.mubr.f32.vlgmr.msra.gmra.mxu0 %v4460_v25  ;;  %4018 = vmatmul.mubr.f32.vlgmr.msra.gmra.mxu1 %v1001_v49  ;;  %v4609_v17 = vsub.f32 %v3871_v7, %v4603_v12 }
  0x3f   : > { %4001 = vmatpush3.msra.mxu0 %v4424_v16  ;;  %4002 = vmatprep.mubr.msk.f32.mxu0 %vm4293_vm1, %v4292_v1 }
  0x40   : > { %4010 = vmatprep.subr.mxu0 %v4292_v1  ;;  %4026 = vmatpush3.msra.mxu1 %v4424_v16  ;;  %v2475_v22 = vand.u32 4294901760, %v4609_v17 }
  0x41   : > { %4027 = vmatprep.mubr.msk.f32.mxu1 %vm4293_vm1, %v4292_v1  ;;  %4035 = vmatprep.subr.mxu1 %v4292_v1 }
  0x42   : > { %4003 = vmatmul.mubr.f32.vlgmr.msra.gmra.mxu0 %v1003_v56  ;;  %4028 = vmatmul.mubr.f32.vlgmr.msra.gmra.mxu1 %v4474_v32  ;;  %v2476_v25 = vsub.f32 %v4609_v17, %v2475_v22 }
  0x43   : > { %4011 = vmatpush3.msra.mxu0 %v4442_v19  ;;  %4012 = vmatprep.mubr.msk.f32.mxu0 %vm4293_vm1, %v4292_v1 }
  0x44   : > { %4020 = vmatprep.subr.mxu0 %v4292_v1  ;;  %4036 = vmatpush3.msra.mxu1 %v1497_v59  ;;  %v2477_v28 = vand.u32 4294901760, %v2476_v25 }
  0x45   : > { %4037 = vmatprep.mubr.msk.f32.mxu1 %vm4293_vm1, %v4292_v1  ;;  %4045 = vmatprep.subr.mxu1 %v4292_v1 }
  0x46   : > { %4013 = vmatmul.mubr.f32.vlgmr.msra.gmra.mxu0 %v1000_v41  ;;  %4038 = vmatmul.mubr.f32.vlgmr.msra.gmra.mxu1 %v4515_v53 }
  0x47   : > { %4021 = vmatpush3.msra.mxu0 %v1042_v27  ;;  %4022 = vmatprep.mubr.msk.f32.mxu0 %vm4293_vm1, %v4292_v1 }
  0x48   : > { %4030 = vmatprep.subr.mxu0 %v4292_v1  ;;  %4046 = vmatpush3.msra.mxu1 %v4481_v36 }
  0x49   : > { %4047 = vmatprep.mubr.msk.f32.mxu1 %vm4293_vm1, %v4292_v1  ;;  %4055 = vmatprep.subr.mxu1 %v4292_v1 }
  0x4a   : > { %4023 = vmatmul.mubr.f32.vlgmr.msra.gmra.mxu0 %v4474_v32  ;;  %4048 = vmatmul.mubr.f32.vlgmr.msra.gmra.mxu1 %v1454_v60 }
  0x4b   : > { %4031 = vmatpush3.msra.mxu0 %v4481_v36  ;;  %4032 = vmatprep.mubr.msk.f32.mxu0 %vm4293_vm1, %v4292_v1 }
  0x4c   : > { %4040 = vmatprep.subr.mxu0 %v4292_v1  ;;  %4056 = vmatpush3.msra.mxu1 %v4481_v36 }
  0x4d   : > { %4057 = vmatprep.mubr.msk.f32.mxu1 %vm4293_vm1, %v4292_v1  ;;  %4067 = vmatprep.subr.mxu1 %v4292_v1 }
  0x4e   : > { %4033 = vmatmul.mubr.f32.vlgmr.msra.gmra.mxu0 %v1456_v0  ;;  %4058 = vmatmul.mubr.f32.vlgmr.msra.gmra.mxu1 %v4515_v53 }
  0x4f   : > { %4041 = vmatpush3.msra.mxu0 %v4496_v46  ;;  %4042 = vmatprep.mubr.msk.f32.mxu0 %vm4293_vm1, %v4292_v1 }
  0x50   : > { %4050 = vmatprep.subr.mxu0 %v4292_v1  ;;  %4068 = vmatpush3.msra.mxu1 %v1497_v59 }
  0x51   : > { %4069 = vmatprep.subr.mxu1 %v4292_v1  ;;  %4071 = vmatprep.mubr.msk.f32.mxu1 %vm4293_vm1, %v4292_v1 }
  0x52   : > { %4043 = vmatmul.mubr.f32.vlgmr.msra.gmra.mxu0 %v1453_v57  ;;  %4070 = vmatpush3.msra.mxu1 %v1999_v3 }
  0x53   : > { %4051 = vmatpush3.msra.mxu0 %v4509_v51  ;;  %4052 = vmatprep.mubr.msk.f32.mxu0 %vm4293_vm1, %v4292_v1 }
  0x54   : > { %4081 = vmatprep.subr.mxu1 %v4292_v1  ;;  %4060 = vmatprep.subr.mxu0 %v4292_v1 }
  0x56   : > { %4053 = vmatmul.mubr.f32.vlgmr.msra.gmra.mxu0 %v4515_v53 }
  0x57   : > { %4061 = vmatpush3.msra.mxu0 %v4481_v36  ;;  %4064 = vmatprep.mubr.msk.f32.mxu0 %vm4293_vm1, %v4292_v1 }
  0x58   : > { %4062 = vmatprep.subr.mxu0 %v4292_v1 }
  0x59   : > { %4063 = vmatpush3.msra.mxu0 %v4533_v58 }
  0x5a   : > { %4074 = vmatprep.subr.mxu0 %v4292_v1 }
  0x9c   : > { %v1838_v4 = vpop.permute.xlu0 %1837 }
  0x9d   : > { %v1844_v6 = vsel %vm473_vm2, %v4418_v14, %v1838_v4 }
  0x9f   : > { %v1842_v5 = vpop.permute.xlu1 %1841 }
  0xa0   : > { %v1846_v9 = vsel %vm1845_vm5, %v1844_v6, %v1842_v5 }
  0xa1   : > { %v1859_v16 = vrot.slane %v1846_v9, 6 }
  0xa2   : > { %v1850_v10 = vpop.permute.xlu0 %1849 }
  0xa3   : > { %v1854_v11 = vpop.permute.xlu1 %1853  ;;  %v1856_v13 = vsel %vm473_vm2, %v4444_v20, %v1850_v10  ;;  %v438_v10 = vstv %s4657_s27 }
  0xa4   : > { %v1857_v15 = vsel %vm1845_vm5, %v1856_v13, %v1854_v11 }
  0xa5   : > { %v1862_v14 = vrot.slane %v1857_v15, 6 }
  0xa7   : > { %v1865_v18 = vsel %vm1864_vm6, %v1859_v16, %v1862_v14 }
  0xa8   : > { %v1880_v19 = vsel %vm1878_vm7, %v1865_v18, 0  ;;  %v439_v18 = vadd.s32 %v438_v10, %v4407_v8 }
  0xa9   : > { %v1949_v21 = vand.u32 4294901760, %v1880_v19 }
  0xab   : > { %4072 = vmatmul.mubr.f32.vlgmr.msra.gmra.mxu1 %v1949_v21  ;;  %v1950_v23 = vsub.f32 %v1880_v19, %v1949_v21 }
  0xac   : > { %4082 = vmatpush3.msra.mxu1 %v4481_v36  ;;  %4085 = vmatprep.mubr.msk.f32.mxu1 %vm4293_vm1, %v4292_v1 }
  0xad   : > { %4083 = vmatprep.subr.mxu1 %v4292_v1  ;;  %v1951_v24 = vand.u32 4294901760, %v1950_v23 }
  0xae   : > { %4084 = vmatpush3.msra.mxu1 %v4533_v58 }
  0xaf   : > { %4086 = vmatmul.mubr.f32.vlgmr.msra.gmra.mxu1 %v1951_v24  ;;  %4095 = vmatprep.subr.mxu1 %v4292_v1  ;;  %v1952_v26 = vsub.f32 %v1950_v23, %v1951_v24 }
  0xb0   : > { %4096 = vmatpush3.msra.mxu1 %v4481_v36  ;;  %4099 = vmatprep.mubr.msk.f32.mxu1 %vm4293_vm1, %v4292_v1 }
  0xb1   : > { %4097 = vmatprep.subr.mxu1 %v4292_v1  ;;  %v1953_v27 = vand.u32 4294901760, %v1952_v26 }
  0xb2   : > { %4098 = vmatpush3.msra.mxu1 %v4533_v58 }
  0xb3   : > { %4065 = vmatmul.mubr.f32.vlgmr.msra.gmra.mxu0 %v1953_v27  ;;  %4100 = vmatmul.mubr.f32.vlgmr.msra.gmra.mxu1 %v1949_v21  ;;  %v2812_v27 = vld [vmem:[%s4794_s6] sm:$0xff] }
  0xb4   : > { %4075 = vmatpush3.msra.mxu0 %v4496_v46  ;;  %4078 = vmatprep.mubr.msk.f32.mxu0 %vm4293_vm1, %v4292_v1 }
  0xb5   : > { %4076 = vmatprep.subr.mxu0 %v4292_v1  ;;  %4107 = vmatprep.subr.mxu1 %v4292_v1 }
  0xb6   : > { %4077 = vmatpush3.msra.mxu0 %v4545_v61  ;;  %4108 = vmatpush3.msra.mxu1 %v2477_v28 }
  0xb7   : > { %4088 = vmatprep.subr.mxu0 %v4292_v1  ;;  %4079 = vmatmul.mubr.f32.vlgmr.msra.gmra.mxu0 %v1950_v23 }
  0xb8   : > { %4089 = vmatpush3.msra.mxu0 %v4509_v51  ;;  %4092 = vmatprep.mubr.msk.f32.mxu0 %vm4293_vm1, %v4292_v1 }
  0xb9   : > { %4090 = vmatprep.subr.mxu0 %v4292_v1  ;;  %4109 = vmatprep.mubr.msk.f32.mxu1 %vm4293_vm1, %v4292_v1 }
  0xba   : > { %4091 = vmatpush3.msra.mxu0 %v1997_v63  ;;  %4117 = vmatprep.subr.mxu1 %v4292_v1 }
  0xbb   : > { %4093 = vmatmul.mubr.f32.vlgmr.msra.gmra.mxu0 %v1949_v21  ;;  %4102 = vmatprep.subr.mxu0 %v4292_v1  ;;  %v440_v21 = vstv %s4654_s26 }
  0xbc   : > { %4103 = vmatpush3.msra.mxu0 %v4603_v12  ;;  %4104 = vmatprep.mubr.msk.f32.mxu0 %vm4293_vm1, %v4292_v1  ;;  %vm441_vm8 = vcmp.lt.s32.totalorder %v439_v18, %v440_v21 }
  0xbd   : > { %4112 = vmatprep.subr.mxu0 %v4292_v1 }
  0xee   : > { %v629_v29 = vpop.f32.mrf.mxu1 }
  0xf0   : > { %v3979_v30 = vpop.f32.mrf.mxu1 }
  0xf1   : > { %v4668_v30 = vsel %vm441_vm8, 1.0, %v4292_v1 }
  0xf2   : > { %v777_v31 = vpop.f32.mrf.mxu1 }
  0xf4   : > { %v3989_v32 = vpop.f32.mrf.mxu1 }
  0xf6   : > { %v553_v34 = vpop.f32.mrf.mxu0  ;;  %v923_v35 = vpop.f32.mrf.mxu1 }
  0xf7   : > { %v554_v45 = vadd.f32 %v4650_v40, %v553_v34 }
  0xf8   : > { %v3974_v36 = vpop.f32.mrf.mxu0  ;;  %v3999_v37 = vpop.f32.mrf.mxu1 }
  0xf9   : > { %v630_v50 = vadd.f32 %v629_v29, %v554_v45 }
  0xfa   : > { %v703_v38 = vpop.f32.mrf.mxu0  ;;  %v1081_v39 = vpop.f32.mrf.mxu1 }
  0xfb   : > { %v704_v56 = vadd.f32 %v703_v38, %v630_v50 }
  0xfc   : > { %v3984_v41 = vpop.f32.mrf.mxu0  ;;  %v4009_v42 = vpop.f32.mrf.mxu1 }
  0xfd   : > { %v778_v62 = vadd.f32 %v777_v31, %v704_v56  ;;  %v4670_v31 = vand.u32 4294901760, %v2812_v27 }
  0xfe   : > { %v851_v43 = vpop.f32.mrf.mxu0  ;;  %v1229_v44 = vpop.f32.mrf.mxu1 }
  0xff   : > { %v852_v5 = vadd.f32 %v851_v43, %v778_v62 }
 0x100   : > { %v3994_v46 = vpop.f32.mrf.mxu0  ;;  %v4019_v47 = vpop.f32.mrf.mxu1 }
 0x101   : > { %v924_v15 = vadd.f32 %v923_v35, %v852_v5  ;;  %v4674_v35 = vsub.f32 %v2812_v27, %v4670_v31  ;;  %v2352_v5 = vsub.s32 1, %v4407_v8 }
 0x102   : > { %v1005_v48 = vpop.f32.mrf.mxu0  ;;  %v1375_v49 = vpop.f32.mrf.mxu1 }
 0x103   : > { %v1082_v51 = vadd.f32 %v1081_v39, %v1005_v48  ;;  %v2925_v39 = vand.u32 4294901760, %v4674_v35  ;;  %v1869_v48 = vstv %s3868_s28 }
 0x104   : > { %v4004_v52 = vpop.f32.mrf.mxu0  ;;  %v4029_v53 = vpop.f32.mrf.mxu1 }
 0x105   : > { %v2926_v43 = vsub.f32 %v4674_v35, %v2925_v39 }
 0x106   : > { %v1155_v54 = vpop.f32.mrf.mxu0  ;;  %v1534_v55 = vpop.f32.mrf.mxu1 }
 0x107   : > { %v1156_v57 = vadd.f32 %v1155_v54, %v1082_v51  ;;  %v2927_v46 = vand.u32 4294901760, %v2926_v43 }
 0x108   : > { %v4014_v58 = vpop.f32.mrf.mxu0  ;;  %v4039_v59 = vpop.f32.mrf.mxu1 }
 0x109   : > { %v1230_v63 = vadd.f32 %v1229_v44, %v1156_v57 }
 0x10a   : > { %v1303_v60 = vpop.f32.mrf.mxu0  ;;  %v1682_v61 = vpop.f32.mrf.mxu1 }
 0x10b   : > { %v1304_v6 = vadd.f32 %v1303_v60, %v1230_v63 }
 0x10c   : > { %v4024_v0 = vpop.f32.mrf.mxu0  ;;  %v4049_v2 = vpop.f32.mrf.mxu1 }
 0x10d   : > { %v1376_v16 = vadd.f32 %v1375_v49, %v1304_v6  ;;  %v1870_v49 = vstv %s3879_s29 }
 0x10e   : > { %v1458_v3 = vpop.f32.mrf.mxu0  ;;  %v1828_v4 = vpop.f32.mrf.mxu1  ;;  %v1871_v53 = vsel %vm450_vm3, %v1869_v48, %v1870_v49 }
 0x10f   : > { %v1535_v7 = vadd.f32 %v1534_v55, %v1458_v3  ;;  %v1379_v25 = vadd.f32 %v1376_v16, %v924_v15  ;;  %vm1872_vm9 = vcmp.ge.s32.totalorder %v1871_v53, 0  ;;  %vm1873_vm10 = vcmp.lt.s32.totalorder %v1871_v53, %v440_v21 }
 0x110   : > { %v4034_v9 = vpop.f32.mrf.mxu0  ;;  %v4059_v11 = vpop.f32.mrf.mxu1  ;;  %vm1874_vm11 = vmand %vm1872_vm9, %vm1873_vm10 }
 0x111   : > { %v3870_v63 = vsel %vm1874_vm11, 1.0, %v4292_v1 }
 0x112   : > { %v1608_v13 = vpop.f32.mrf.mxu0 }
 0x113   : > { %v1609_v14 = vadd.f32 %v1608_v13, %v1535_v7 }
 0x114   : > { %v4044_v19 = vpop.f32.mrf.mxu0 }
 0x115   : > { %v1683_v23 = vadd.f32 %v1682_v61, %v1609_v14 }
 0x116   : > { %v1756_v24 = vpop.f32.mrf.mxu0 }
 0x117   : > { %v1757_v26 = vadd.f32 %v1756_v24, %v1683_v23 }
 0x118   : > { %v4054_v28 = vpop.f32.mrf.mxu0 }
 0x119   : > { %v1829_v29 = vadd.f32 %v1828_v4, %v1757_v26 }
 0x11b   : > { %v1832_v32 = vadd.f32 %v1829_v29, %v1379_v25 }
 0x11d   : > { %v1833_v34 = vmul.f32 %v4668_v30, %v1832_v32 }
 0x11f   : > { %v4676_v36 = vmax.f32 %v1833_v34, 0.0 }
 0x121   : > { %v2364_v37 = vsel %vm1845_vm5, %v4676_v36, 0  ;;  %v2343_v9 = vrot.slane %v4676_v36, 7  ;;  %v2349_v10 = vrot.slane %v4676_v36, 1 }
 0x122   : > { %v2432_v38 = vand.u32 4294901760, %v2364_v37 }
 0x124   : > { %v2433_v41 = vsub.f32 %v2364_v37, %v2432_v38  ;;  %4110 = vmatmul.mubr.f32.vlgmr.msra.gmra.mxu1 %v2432_v38  ;;  %v3872_v37 = vld [vmem:[%s4795_s7] ss:$0 sm:$0xff] }
 0x125   : > { %4118 = vmatpush3.msra.mxu1 %v4603_v12  ;;  %4119 = vmatprep.mubr.msk.f32.mxu1 %vm4293_vm1, %v4292_v1 }
 0x126   : > { %v2434_v42 = vand.u32 4294901760, %v2433_v41  ;;  %4127 = vmatprep.subr.mxu1 %v4292_v1 }
 0x128   : > { %v2435_v44 = vsub.f32 %v2433_v41, %v2434_v42  ;;  %4120 = vmatmul.mubr.f32.vlgmr.msra.gmra.mxu1 %v2434_v42 }
 0x129   : > { %4128 = vmatpush3.msra.mxu1 %v4603_v12  ;;  %4129 = vmatprep.mubr.msk.f32.mxu1 %vm4293_vm1, %v4292_v1 }
 0x12a   : > { %v2436_v45 = vand.u32 4294901760, %v2435_v44  ;;  %4137 = vmatprep.subr.mxu1 %v4292_v1 }
 0x12c   : > { %4105 = vmatmul.mubr.f32.vlgmr.msra.gmra.mxu0 %v2436_v45  ;;  %4130 = vmatmul.mubr.f32.vlgmr.msra.gmra.mxu1 %v2432_v38 }
 0x12d   : > { %4113 = vmatpush3.msra.mxu0 %v4609_v17  ;;  %4114 = vmatprep.mubr.msk.f32.mxu0 %vm4293_vm1, %v4292_v1 }
 0x12e   : > { %4122 = vmatprep.subr.mxu0 %v4292_v1  ;;  %4138 = vmatpush3.msra.mxu1 %v2927_v46 }
 0x12f   : > { %4139 = vmatprep.mubr.msk.f32.mxu1 %vm4293_vm1, %v4292_v1  ;;  %4147 = vmatprep.subr.mxu1 %v4292_v1 }
 0x130   : > { %4115 = vmatmul.mubr.f32.vlgmr.msra.gmra.mxu0 %v2433_v41 }
 0x131   : > { %4123 = vmatpush3.msra.mxu0 %v2475_v22  ;;  %4124 = vmatprep.mubr.msk.f32.mxu0 %vm4293_vm1, %v4292_v1 }
 0x132   : > { %4132 = vmatprep.subr.mxu0 %v4292_v1 }
 0x134   : > { %4125 = vmatmul.mubr.f32.vlgmr.msra.gmra.mxu0 %v2432_v38 }
 0x135   : > { %4133 = vmatpush3.msra.mxu0 %v4670_v31  ;;  %4134 = vmatprep.mubr.msk.f32.mxu0 %vm4293_vm1, %v4292_v1 }
 0x136   : > { %4142 = vmatprep.subr.mxu0 %v4292_v1 }
 0x16b   : > { %v2036_v12 = vpop.f32.mrf.mxu1 }
 0x16d   : > { %v4073_v47 = vpop.f32.mrf.mxu1 }
 0x16f   : > { %v2187_v17 = vpop.f32.mrf.mxu1 }
 0x171   : > { %v4087_v22 = vpop.f32.mrf.mxu1 }
 0x173   : > { %v1955_v50 = vpop.f32.mrf.mxu0  ;;  %v2337_v51 = vpop.f32.mrf.mxu1 }
 0x174   : > { %v1956_v52 = vadd.f32 %v4650_v40, %v1955_v50  ;;  %v3873_v40 = vld [vmem:[%s4794_s6 + $0x10] sm:$0xff] }
 0x175   : > { %v4066_v54 = vpop.f32.mrf.mxu0  ;;  %v4101_v55 = vpop.f32.mrf.mxu1  ;;  %v3299_v3 = vand.u32 4294901760, %v3873_v40 }
 0x176   : > { %v2037_v56 = vadd.f32 %v2036_v12, %v1956_v52 }
 0x177   : > { %v2112_v57 = vpop.f32.mrf.mxu0  ;;  %v3376_v7 = vsub.f32 %v3873_v40, %v3299_v3 }
 0x178   : > { %v2113_v58 = vadd.f32 %v2112_v57, %v2037_v56 }
 0x179   : > { %v4080_v59 = vpop.f32.mrf.mxu0  ;;  %v3377_v19 = vand.u32 4294901760, %v3376_v7 }
 0x17a   : > { %v2188_v60 = vadd.f32 %v2187_v17, %v2113_v58 }
 0x17b   : > { %v2264_v61 = vpop.f32.mrf.mxu0  ;;  %v3378_v24 = vsub.f32 %v3376_v7, %v3377_v19 }
 0x17c   : > { %v2265_v62 = vadd.f32 %v2264_v61, %v2188_v60 }
 0x17d   : > { %v4094_v0 = vpop.f32.mrf.mxu0  ;;  %v3379_v27 = vand.u32 4294901760, %v3378_v24 }
 0x17e   : > { %v2338_v2 = vadd.f32 %v2337_v51, %v2265_v62 }
 0x180   : > { %v2341_v4 = vmul.f32 %v3870_v63, %v2338_v2 }
 0x182   : > { %v2342_v6 = vmax.f32 %v2341_v4, 0.0 }
 0x184   : > { %v2347_v11 = vrot.slane %v2342_v6, %v464_v33  ;;  %v2353_v13 = vrot.slane %v2342_v6, %v2352_v5 }
 0x186   : > { %v2348_v15 = vsel %vm450_vm3, %v2347_v11, %v2343_v9  ;;  %v2354_v16 = vsel %vm459_vm4, %v2353_v13, %v2349_v10 }
 0x187   : > { %v2814_v14 = vsel %vm1845_vm5, %v2348_v15, 0  ;;  %v3266_v21 = vsel %vm1845_vm5, %v2354_v16, 0 }
 0x188   : > { %v2882_v18 = vand.u32 4294901760, %v2814_v14  ;;  %v3334_v25 = vand.u32 4294901760, %v3266_v21 }
 0x18a   : > { %v2883_v23 = vsub.f32 %v2814_v14, %v2882_v18  ;;  %4140 = vmatmul.mubr.f32.vlgmr.msra.gmra.mxu1 %v2882_v18  ;;  %v3335_v28 = vsub.f32 %v3266_v21, %v3334_v25 }
 0x18b   : > { %4148 = vmatpush3.msra.mxu1 %v4670_v31  ;;  %4149 = vmatprep.mubr.msk.f32.mxu1 %vm4293_vm1, %v4292_v1 }
 0x18c   : > { %v2884_v33 = vand.u32 4294901760, %v2883_v23  ;;  %4157 = vmatprep.subr.mxu1 %v4292_v1  ;;  %v3336_v29 = vand.u32 4294901760, %v3335_v28 }
 0x18e   : > { %4150 = vmatmul.mubr.f32.vlgmr.msra.gmra.mxu1 %v2884_v33  ;;  %v2885_v8 = vsub.f32 %v2883_v23, %v2884_v33 }
 0x18f   : > { %4158 = vmatpush3.msra.mxu1 %v4670_v31  ;;  %4159 = vmatprep.mubr.msk.f32.mxu1 %vm4293_vm1, %v4292_v1  ;;  %v3337_v31 = vsub.f32 %v3335_v28, %v3336_v29 }
 0x190   : > { %v2886_v26 = vand.u32 4294901760, %v2885_v8  ;;  %4167 = vmatprep.subr.mxu1 %v4292_v1 }
 0x191   : > { %v3338_v32 = vand.u32 4294901760, %v3337_v31 }
 0x192   : > { %4135 = vmatmul.mubr.f32.vlgmr.msra.gmra.mxu0 %v2886_v26  ;;  %4160 = vmatmul.mubr.f32.vlgmr.msra.gmra.mxu1 %v2882_v18 }
 0x193   : > { %4143 = vmatpush3.msra.mxu0 %v4674_v35  ;;  %4144 = vmatprep.mubr.msk.f32.mxu0 %vm4293_vm1, %v4292_v1 }
 0x194   : > { %4152 = vmatprep.subr.mxu0 %v4292_v1  ;;  %4168 = vmatpush3.msra.mxu1 %v3379_v27 }
 0x195   : > { %4169 = vmatprep.mubr.msk.f32.mxu1 %vm4293_vm1, %v4292_v1  ;;  %4177 = vmatprep.subr.mxu1 %v4292_v1 }
 0x196   : > { %4145 = vmatmul.mubr.f32.vlgmr.msra.gmra.mxu0 %v2883_v23  ;;  %4170 = vmatmul.mubr.f32.vlgmr.msra.gmra.mxu1 %v3334_v25 }
 0x197   : > { %4153 = vmatpush3.msra.mxu0 %v2925_v39  ;;  %4154 = vmatprep.mubr.msk.f32.mxu0 %vm4293_vm1, %v4292_v1 }
 0x198   : > { %4162 = vmatprep.subr.mxu0 %v4292_v1  ;;  %4178 = vmatpush3.msra.mxu1 %v3299_v3 }
 0x199   : > { %4179 = vmatprep.mubr.msk.f32.mxu1 %vm4293_vm1, %v4292_v1  ;;  %4187 = vmatprep.subr.mxu1 %v4292_v1 }
 0x19a   : > { %4155 = vmatmul.mubr.f32.vlgmr.msra.gmra.mxu0 %v2882_v18  ;;  %4180 = vmatmul.mubr.f32.vlgmr.msra.gmra.mxu1 %v3336_v29 }
 0x19b   : > { %4163 = vmatpush3.msra.mxu0 %v3299_v3  ;;  %4164 = vmatprep.mubr.msk.f32.mxu0 %vm4293_vm1, %v4292_v1 }
 0x19c   : > { %4172 = vmatprep.subr.mxu0 %v4292_v1  ;;  %4188 = vmatpush3.msra.mxu1 %v3299_v3 }
 0x19d   : > { %4189 = vmatprep.mubr.msk.f32.mxu1 %vm4293_vm1, %v4292_v1 }
 0x19e   : > { %4165 = vmatmul.mubr.f32.vlgmr.msra.gmra.mxu0 %v3338_v32  ;;  %4190 = vmatmul.mubr.f32.vlgmr.msra.gmra.mxu1 %v3334_v25 }
 0x19f   : > { %4173 = vmatpush3.msra.mxu0 %v3376_v7  ;;  %4174 = vmatprep.mubr.msk.f32.mxu0 %vm4293_vm1, %v4292_v1 }
 0x1a0   : > { %4182 = vmatprep.subr.mxu0 %v4292_v1 }
 0x1a2   : > { %4175 = vmatmul.mubr.f32.vlgmr.msra.gmra.mxu0 %v3335_v28 }
 0x1a3   : > { %4183 = vmatpush3.msra.mxu0 %v3377_v19  ;;  %4184 = vmatprep.mubr.msk.f32.mxu0 %vm4293_vm1, %v4292_v1 }
 0x1a6   : > { %4185 = vmatmul.mubr.f32.vlgmr.msra.gmra.mxu0 %v3334_v25 }
 0x1e4   : > { %v2514_v34 = vpop.f32.mrf.mxu1 }
 0x1e6   : > { %v4111_v35 = vpop.f32.mrf.mxu1 }
 0x1e8   : > { %v2662_v36 = vpop.f32.mrf.mxu1 }
 0x1ea   : > { %v4121_v38 = vpop.f32.mrf.mxu1 }
 0x1ec   : > { %v2438_v39 = vpop.f32.mrf.mxu0  ;;  %v2808_v41 = vpop.f32.mrf.mxu1 }
 0x1ed   : > { %v2439_v42 = vadd.f32 %v3872_v37, %v2438_v39 }
 0x1ee   : > { %v4106_v43 = vpop.f32.mrf.mxu0  ;;  %v4131_v44 = vpop.f32.mrf.mxu1 }
 0x1ef   : > { %v2515_v45 = vadd.f32 %v2514_v34, %v2439_v42 }
 0x1f0   : > { %v2588_v46 = vpop.f32.mrf.mxu0 }
 0x1f1   : > { %v2589_v12 = vadd.f32 %v2588_v46, %v2515_v45 }
 0x1f2   : > { %v4116_v47 = vpop.f32.mrf.mxu0 }
 0x1f3   : > { %v2663_v17 = vadd.f32 %v2662_v36, %v2589_v12 }
 0x1f4   : > { %v2736_v1 = vpop.f32.mrf.mxu0 }
 0x1f5   : > { %v2737_v22 = vadd.f32 %v2736_v1, %v2663_v17 }
 0x1f6   : > { %v4126_v48 = vpop.f32.mrf.mxu0 }
 0x1f7   : > { %v2809_v49 = vadd.f32 %v2808_v41, %v2737_v22 }
 0x24a   : > { %v2964_v50 = vpop.f32.mrf.mxu1 }
 0x24c   : > { %v4141_v51 = vpop.f32.mrf.mxu1 }
 0x24e   : > { %v3112_v52 = vpop.f32.mrf.mxu1 }
 0x250   : > { %v4151_v53 = vpop.f32.mrf.mxu1 }
 0x252   : > { %v2888_v54 = vpop.f32.mrf.mxu0  ;;  %v3258_v55 = vpop.f32.mrf.mxu1 }
 0x253   : > { %v2965_v60 = vadd.f32 %v2964_v50, %v2888_v54 }
 0x254   : > { %v4136_v56 = vpop.f32.mrf.mxu0  ;;  %v4161_v57 = vpop.f32.mrf.mxu1 }
 0x256   : > { %v3038_v58 = vpop.f32.mrf.mxu0  ;;  %v3416_v59 = vpop.f32.mrf.mxu1 }
 0x257   : > { %v3039_v40 = vadd.f32 %v3038_v58, %v2965_v60 }
 0x258   : > { %v4146_v61 = vpop.f32.mrf.mxu0  ;;  %v4171_v62 = vpop.f32.mrf.mxu1 }
 0x259   : > { %v3113_v4 = vadd.f32 %v3112_v52, %v3039_v40 }
 0x25a   : > { %v3186_v63 = vpop.f32.mrf.mxu0  ;;  %v3564_v0 = vpop.f32.mrf.mxu1 }
 0x25b   : > { %v3187_v10 = vadd.f32 %v3186_v63, %v3113_v4 }
 0x25c   : > { %v4156_v2 = vpop.f32.mrf.mxu0  ;;  %v4181_v3 = vpop.f32.mrf.mxu1 }
 0x25d   : > { %v3259_v14 = vadd.f32 %v3258_v55, %v3187_v10 }
 0x25e   : > { %v3340_v5 = vpop.f32.mrf.mxu0  ;;  %v3710_v6 = vpop.f32.mrf.mxu1 }
 0x25f   : > { %v3417_v11 = vadd.f32 %v3416_v59, %v3340_v5  ;;  %v3262_v33 = vadd.f32 %v3259_v14, %v2809_v49 }
 0x260   : > { %v4166_v7 = vpop.f32.mrf.mxu0  ;;  %v4191_v9 = vpop.f32.mrf.mxu1 }
 0x262   : > { %v3490_v13 = vpop.f32.mrf.mxu0 }
 0x263   : > { %v3491_v15 = vadd.f32 %v3490_v13, %v3417_v11 }
 0x264   : > { %v4176_v16 = vpop.f32.mrf.mxu0 }
 0x265   : > { %v3565_v18 = vadd.f32 %v3564_v0, %v3491_v15 }
 0x266   : > { %v3638_v19 = vpop.f32.mrf.mxu0 }
 0x267   : > { %v3639_v21 = vadd.f32 %v3638_v19, %v3565_v18 }
 0x268   : > { %v4186_v23 = vpop.f32.mrf.mxu0 }
 0x269   : > { %v3711_v24 = vadd.f32 %v3710_v6, %v3639_v21 }
 0x26b   : > { %v3714_v25 = vadd.f32 %v3711_v24, %v3262_v33 }
 0x26d   : > { %v3715_v8 = vmul.f32 %v4668_v30, %v3714_v25 }
 0x26f   : > { %v3716_v26 = vadd.f32 %v3715_v8, %v4444_v20 }
 0x271   : > { %v3717_v27 = vmax.f32 %v3716_v26, 0.0 }
 0x273   : > { %3718 = vst.msk [vmem:[%s420_s20] sm:$0xff] %vm473_vm2, %v3717_v27 }
 0x274 PF: > { %s24_s13 = sadd.s32 1, %s4289_s13   ;;  %s4798_s10 = smov %s4281_s12 }
 0x275   : > { %p21_p2 = scmp.ge.s32.totalorder %s24_s13, 6   ;;  %s4799_s11 = smov %s4285_s0 }
 0x276   : > { %s4800_s12 = smov %s4803_s14  ;;  %s4801_s0 = smov %s4807_s15 }
 0x277   :  { %23 = sbr.rel (!%p21_p2) target bundleno = 18 (0x12), region = 86 }

</bundles_post_ra>
